<compile_context>
chip_gen: v5e
topology: v5e:2x2
jax: 0.10.0
libtpu: 0.0.40
codegen_flags: <defaults>
</compile_context>

<pallas_src>
import functools

import jax
import jax.numpy as jnp
from jax.experimental import pallas as pl
from jax.experimental.pallas import tpu as pltpu


_LANE = 128
_TARGET_BLOCK_BYTES = 4 * 1024 * 1024      # ~4 MiB/block: per-step overhead ~6% of HBM time
_MAX_VMEM_LIMIT_BYTES = 48 * 1024 * 1024   # <= v7x 64 MiB physical VMEM
_MIN_VMEM_LIMIT_BYTES = 16 * 1024 * 1024   # never request less than v5e's scoped default
_MIN_GRID_STEPS = 8                        # >= 8 and even: pipelining + v7x 2-TC balance


def _swish_kernel(x_ref, o_ref, *, exact):
    xf = x_ref[...].astype(jnp.float32)
    if exact:
        # f32 inputs: exact sigmoid (required for v5e accuracy path anyway).
        sig = jax.nn.sigmoid(xf)
    else:
        # bf16 / fp16 inputs: exp on the EUP + approx reciprocal (vrcp) — half
        # the EUP work of an exact divide; fully hidden under HBM traffic.
        sig = pl.reciprocal(1.0 + jnp.exp(-xf), approx=True)
    o_ref[...] = (xf * sig).astype(o_ref.dtype)


def _swish_xla(x):
    """Plain-XLA swish for the tiny (< 128-element) ragged tail."""
    xf = x.astype(jnp.float32)
    return (xf * jax.nn.sigmoid(xf)).astype(x.dtype)


def _choose_lanes(n_aligned: int) -> int:
    """Lane-dense last dim (multiple of 128) dividing the 128-aligned size."""
    for lanes in (1024, 512, 256, 128):
        if n_aligned % lanes == 0:
            return lanes
    raise AssertionError("n_aligned must be a multiple of 128")


def _choose_tile_rows(rows: int, lanes: int, itemsize: int, sublane_pack: int) -> int:
    """Block rows: ~4 MiB blocks, but prefer >= 8 (and even) grid steps."""
    if rows <= sublane_pack:
        return rows  # single full-extent block (tiny input)

    n_units = pl.cdiv(rows, sublane_pack)          # sublane_pack-row units available
    desired_rows = max(
        sublane_pack,
        (_TARGET_BLOCK_BYTES // (lanes * itemsize)) // sublane_pack * sublane_pack,
    )
    # Step-count target: enough steps for the block-size goal, but at least
    # _MIN_GRID_STEPS so DMA-in/compute/DMA-out overlap and v7x's 2 TCs both
    # get work. Prefer an even count for 2-TC load balance.
    steps = max(pl.cdiv(rows, desired_rows), _MIN_GRID_STEPS)
    steps = min(steps, n_units)
    if steps > 1 and steps % 2 == 1:
        steps = steps + 1 if steps + 1 <= n_units else steps - 1
    steps = max(steps, 1)

    tile_rows = pl.cdiv(n_units, steps) * sublane_pack
    grid = pl.cdiv(rows, tile_rows)
    # Rounding can re-introduce an odd grid; one fix-up attempt.
    if grid > 1 and grid % 2 == 1 and grid + 1 <= n_units:
        alt = pl.cdiv(n_units, grid + 1) * sublane_pack
        if pl.cdiv(rows, alt) % 2 == 0:
            tile_rows = alt
    return tile_rows


def _swish_2d(x2d: jax.Array) -> jax.Array:
    rows, lanes = x2d.shape
    dtype = x2d.dtype
    itemsize = jnp.dtype(dtype).itemsize
    # sublane packing: 8 for f32, 16 for bf16, 32 for 8-bit dtypes
    sublane_pack = max(8, 32 // max(1, itemsize))

    tile_rows = _choose_tile_rows(rows, lanes, itemsize, sublane_pack)
    grid = (pl.cdiv(rows, tile_rows),)

    block_bytes = tile_rows * lanes * itemsize
    # in + out, double-buffered = 4 buffers; ~2.5x headroom for compiler scratch
    # and f32 intermediates; clamped so it is safe on every generation.
    vmem_limit = int(
        min(max(int(2.5 * 4 * block_bytes), _MIN_VMEM_LIMIT_BYTES), _MAX_VMEM_LIMIT_BYTES)
    )

    kernel = functools.partial(_swish_kernel, exact=(itemsize >= 4))

    return pl.pallas_call(
        kernel,
        out_shape=jax.ShapeDtypeStruct((rows, lanes), dtype),
        grid_spec=pltpu.PrefetchScalarGridSpec(
            num_scalar_prefetch=0,
            grid=grid,
            in_specs=[pl.BlockSpec((tile_rows, lanes), lambda i: (i, 0))],
            out_specs=pl.BlockSpec((tile_rows, lanes), lambda i: (i, 0)),
        ),
        compiler_params=pltpu.CompilerParams(
            dimension_semantics=("parallel",),
            vmem_limit_bytes=vmem_limit,
        ),
    )(x2d)


def swish(x: jax.Array) -> jax.Array:
    """Elementwise Swish: x * sigmoid(x). Any float shape/dtype."""
    orig_shape = x.shape
    n = x.size
    if n == 0:
        return x

    x_flat = jnp.ravel(x)
    n_main = (n // _LANE) * _LANE  # largest 128-aligned prefix

    if n_main == 0:
        # Whole input is smaller than one 128-lane vector: plain XLA is cheaper
        # than launching a kernel.
        return _swish_xla(x_flat).reshape(orig_shape)

    lanes = _choose_lanes(n_main)
    rows = n_main // lanes

    if n_main == n:
        # Common, fully-aligned case: free reshape in, free reshape out.
        return _swish_2d(x_flat.reshape(rows, lanes)).reshape(orig_shape)

    # Ragged case: kernel on the aligned prefix, tiny (<128-element) tail via
    # plain XLA ops. No zero-pad concatenate, no trailing [:n] slice.
    main = _swish_2d(x_flat[:n_main].reshape(rows, lanes)).reshape(-1)
    tail = _swish_xla(x_flat[n_main:])
    return jnp.concatenate([main, tail]).reshape(orig_shape)


def _swish_ref(x):
    xf = x.astype(jnp.float32)
    return (xf * jax.nn.sigmoid(xf)).astype(x.dtype)


if __name__ == "__main__":
    key = jax.random.PRNGKey(0)

    # NCHW input like the PyTorch module would receive.
    x = jax.random.normal(key, (2, 4, 16, 16), dtype=jnp.float32)
    out = jax.block_until_ready(swish(x))
    assert out.shape == x.shape and out.dtype == x.dtype
    assert jnp.allclose(out, _swish_ref(x), atol=1e-6, rtol=1e-6)

    # Ragged path (size not a multiple of 128): prefix kernel + XLA tail.
    x2 = jax.random.normal(jax.random.PRNGKey(1), (3, 5, 7, 11), dtype=jnp.float32)
    out2 = jax.block_until_ready(swish(x2))
    assert out2.shape == x2.shape and out2.dtype == x2.dtype
    assert jnp.allclose(out2, _swish_ref(x2), atol=1e-6, rtol=1e-6)

    # Larger aligned case: exercises the >=8-step even grid and 4 MiB blocks.
    x3 = jax.random.normal(jax.random.PRNGKey(2), (8, 64, 64, 64), dtype=jnp.float32)
    out3 = jax.block_until_ready(swish(x3))
    assert jnp.allclose(out3, _swish_ref(x3), atol=1e-6, rtol=1e-6)

    # bf16 path (approx-reciprocal sigmoid).
    xb = jax.random.normal(jax.random.PRNGKey(3), (4, 8, 32, 32), dtype=jnp.bfloat16)
    outb = jax.block_until_ready(swish(xb))
    assert outb.dtype == xb.dtype
    assert jnp.allclose(outb.astype(jnp.float32), _swish_ref(xb).astype(jnp.float32),
                        atol=2e-2, rtol=2e-2)

    print("KERNEL_OK")
</pallas_src>

<mosaic_0001>
module attributes {stable_mosaic.version = 11 : i64} {
  func.func @_swish_kernel(%arg0: i32, %arg1: memref<2x1024xf32, #tpu.memory_space<vmem>>, %arg2: memref<2x1024xf32, #tpu.memory_space<vmem>>) attributes {dimension_semantics = [#tpu.dimension_semantics<parallel>], iteration_bounds = array<i64: 1>, scalar_prefetch = 0 : i64, scratch_operands = 0 : i64, tpu.core_type = #tpu.core_type<tc>, window_params = [{transform_indices = @transform_0, window_bounds = array<i64: 2, 1024>}, {transform_indices = @transform_1, window_bounds = array<i64: 2, 1024>}]} {
    %c0 = arith.constant 0 : index
    %c0_0 = arith.constant 0 : index
    %0 = vector.load %arg1[%c0, %c0_0] : memref<2x1024xf32, #tpu.memory_space<vmem>>, vector<2x1024xf32>
    %1 = arith.negf %0 : vector<2x1024xf32>
    %2 = math.exp %1 : vector<2x1024xf32>
    %cst = arith.constant 1.000000e+00 : f32
    %3 = vector.broadcast %cst : f32 to vector<2x1024xf32>
    %4 = arith.addf %3, %2 : vector<2x1024xf32>
    %5 = arith.divf %3, %4 : vector<2x1024xf32>
    %6 = arith.mulf %0, %5 : vector<2x1024xf32>
    %c0_1 = arith.constant 0 : index
    %c0_2 = arith.constant 0 : index
    %7 = vector.load %arg2[%c0_1, %c0_2] : memref<2x1024xf32, #tpu.memory_space<vmem>>, vector<2x1024xf32>
    tpu.vector_store %arg2[%c0_1, %c0_2], %6 {strides = array<i32>} : memref<2x1024xf32, #tpu.memory_space<vmem>>, vector<2x1024xf32>,
    return
  }
  func.func @transform_0(%arg0: i32) -> (i32, i32) {
    %c0_i32 = arith.constant 0 : i32
    %c0_i32_0 = arith.constant 0 : i32
    return %arg0, %c0_i32 : i32, i32
  }
  func.func @transform_1(%arg0: i32) -> (i32, i32) {
    %c0_i32 = arith.constant 0 : i32
    %c0_i32_0 = arith.constant 0 : i32
    return %arg0, %c0_i32 : i32, i32
  }
}

</mosaic_0001>

<bundles_post_ra>
// kernel: tpu_custom_call.1
= control target key start
LH: loop header
LB: loop body
LE: loop exit
PB: predicated region body
PF: predicated region fallthrough
CT: control target
= control target key end

     0   :  { %6 = vsyncpa [#allocation3], 0  ;;  %s166_s0 = inlined_call_operand.hbm [shape: f32[2,1024], index: 0, kind: input, shape index: {}]   ;;  %s167_s1 = inlined_call_operand.hbm [shape: f32[2,1024], index: 1, kind: output, shape index: {}]  }
   0x1   :  { %7 = vsyncpa [#allocation4], 0  ;;  %s13_s8 = sshll.u32 %s166_s0, 4  ;;  %s148_s9 = smov [#allocation2]   ;;  %s14_s8 = int_to_ptr.hbm [resolvable:$true] %s13_s8 }
   0x2   :  { %s15_s10 = sshll.u32 %s148_s9, 4  ;;  %s16_s10 = int_to_ptr.vmem [resolvable:$true] %s15_s10 }
   0x3   :  { %18 = dma.hbm_to_vmem [thread:$0]  %s14_s8, 256, %s16_s10, [#allocation3]  }
   0x4   :  { %144 = dma.done.wait [#allocation3], 256  }
   0x5   :  { %145 = vsyncadd [#allocation3], 4294967040  ;;  %v23_v0 = vld [vmem:[#allocation2] sm:$0xff]  ;;  %v24_v1 = vld [vmem:[#allocation2 + $0x8] sm:$0xff]  ;;  %s149_s0 = smov [#allocation5]   ;;  %s74_s14 = sshll.u32 %s167_s1, 4  ;;  %s75_s14 = int_to_ptr.hbm [resolvable:$true] %s74_s14 }
   0x6   :  { %v84_v2 = vmul.f32 -1.442695, %v23_v0  ;;  %v85_v3 = vmul.f32 -1.442695, %v24_v1  ;;  %s72_s11 = sshll.u32 %s149_s0, 4  ;;  %s73_s11 = int_to_ptr.vmem [resolvable:$true] %s72_s11 }
   0x8   :  { %88 = vpow2.f32 %v84_v2 }
   0x9   :  { %90 = vpow2.f32 %v85_v3 }
   0xe   :  { %v89_v4 = vpop.eup %88 }
   0xf   :  { %v91_v5 = vpop.eup %90  ;;  %v31_v6 = vadd.f32 1.0, %v89_v4 }
  0x10   :  { %v32_v7 = vadd.f32 1.0, %v91_v5 }
  0x11   :  { %92 = vrcp.f32 %v31_v6  ;;  %vm38_vm0 = vweird.f32 %v31_v6  ;;  %v44_v11 = vand.u32 2147483648, %v31_v6  ;;  %v42_v14 = vand.u32 2147483647, %v31_v6 }
  0x12   :  { %94 = vrcp.f32 %v32_v7  ;;  %v59_v15 = vand.u32 2147483648, %v32_v7  ;;  %vm53_vm2 = vweird.f32 %v32_v7  ;;  %v57_v17 = vand.u32 2147483647, %v32_v7 }
  0x13   :  { %v45_v19 = vor.u32 1.1754944e-38, %v44_v11  ;;  %vm43_vm5 = vcmp.eq.f32.partialorder %v42_v14, 8.507059e+37 }
  0x14   :  { %v60_v22 = vor.u32 1.1754944e-38, %v59_v15  ;;  %vm58_vm7 = vcmp.eq.f32.partialorder %v57_v17, 8.507059e+37 }
  0x17   :  { %v93_v8 = vpop.eup %92 }
  0x18   :  { %v95_v9 = vpop.eup %94  ;;  %v34_v10 = vmul.f32 %v93_v8, %v31_v6  ;;  %vm39_vm1 = vweird.f32 %v93_v8 }
  0x19   :  { %v49_v12 = vmul.f32 %v95_v9, %v32_v7  ;;  %vm54_vm3 = vweird.f32 %v95_v9  ;;  %vm40_vm4 = vmor %vm38_vm0, %vm39_vm1 }
  0x1a   :  { %v35_v13 = vsub.f32 1.0, %v34_v10  ;;  %vm55_vm6 = vmor %vm53_vm2, %vm54_vm3 }
  0x1b   :  { %v50_v16 = vsub.f32 1.0, %v49_v12 }
  0x1c   :  { %v36_v18 = vmul.f32 %v93_v8, %v35_v13 }
  0x1d   :  { %v51_v20 = vmul.f32 %v95_v9, %v50_v16 }
  0x1e   :  { %v37_v21 = vadd.f32 %v93_v8, %v36_v18 }
  0x1f   :  { %v52_v23 = vadd.f32 %v95_v9, %v51_v20 }
  0x20   :  { %v41_v24 = vsel %vm40_vm4, %v93_v8, %v37_v21 }
  0x21   :  { %v46_v25 = vsel %vm43_vm5, %v45_v19, %v41_v24  ;;  %v56_v26 = vsel %vm55_vm6, %v95_v9, %v52_v23 }
  0x22   :  { %v63_v27 = vmul.f32 %v46_v25, %v23_v0  ;;  %v61_v28 = vsel %vm58_vm7, %v60_v22, %v56_v26 }
  0x23   :  { %v64_v29 = vmul.f32 %v61_v28, %v24_v1 }
  0x24   :  { %65 = vst [vmem:[#allocation5] sm:$0xff] %v63_v27 }
  0x25   :  { %66 = vst [vmem:[#allocation5 + $0x8] sm:$0xff] %v64_v29 }
  0x26   :  { %77 = dma.vmem_to_hbm [thread:$0]  %s73_s11, 256, %s75_s14, [#allocation4]  }
  0x27   :  { %146 = dma.done.wait [#allocation4], 256  }
  0x28   :  { %147 = vsyncadd [#allocation4], 4294967040 }
  0x29   :  { %82 = vsyncpa [#allocation3], 1 }
  0x2a   :  { %83 = vsyncpa [#allocation4], 1 }

</bundles_post_ra>
